<compile_context>
chip_gen: v5e
topology: v5e:2x2
jax: 0.10.0
libtpu: 0.0.40
codegen_flags: <defaults>
</compile_context>

<pallas_src>
import functools

import jax
import jax.numpy as jnp
from jax.experimental import pallas as pl
from jax.experimental.pallas import tpu as pltpu

N_NODES = 36
N_LAYERS = 5            # -> 4 hidden-to-hidden linears
DEFAULT_TILE_B = 8192   # sweepable


def _round_up(n, m):
    return ((n + m - 1) // m) * m


def _eup_supports_bf16():
    """bf16 transcendental (EUP) path only on v6e / v7x."""
    try:
        kind = jax.devices()[0].device_kind.lower()
    except Exception:
        return False
    return any(tag in kind for tag in ("v6", "v7", "7x"))


def _silu(x, eup_dtype):
    # silu(x) = x * sigmoid(x) = 0.5 * x * (1 + tanh(x/2))  -> single EUP op.
    xh = 0.5 * x
    t = jnp.tanh(xh.astype(eup_dtype)).astype(x.dtype)
    return xh * (1.0 + t)


def mlp_kernel(x_ref, w1_ref, b1_ref, wh_ref, bh_ref,
               wo1_ref, bo1_ref, wo2_ref, bo2_ref, out_ref, cat_ref,
               *, n_hidden, n_nodes_p, apply_softplus, compute_dtype, eup_dtype):
    """All activations are [features, batch_tile]; weights are [out, in]."""

    def mm(w, a):
        # Operands already in compute_dtype (bf16 by default); f32 accumulation.
        return jnp.dot(w, a, preferred_element_type=jnp.float32)

    x = x_ref[...]                                   # (n_in, TB) compute_dtype
    # x slab of the fused concat buffer (f32 scratch: sublane-aligned stores).
    cat_ref[n_nodes_p:, :] = x.astype(jnp.float32)

    # in_to_hidden + SiLU
    h = mm(w1_ref[...], x) + b1_ref[...]             # (n_p, TB) f32
    h = _silu(h, eup_dtype)

    # hidden_to_hidden stack (+ SiLU), statically unrolled
    for i in range(n_hidden):
        h = mm(wh_ref[i], h.astype(compute_dtype)) + bh_ref[i]
        h = _silu(h, eup_dtype)

    # h slab of the fused concat buffer
    cat_ref[:n_nodes_p, :] = h

    # concat([h, x]) @ W1o^T  ==  single matmul over the fused buffer.
    h1 = mm(wo1_ref[...], cat_ref[...].astype(compute_dtype)) + bo1_ref[...]
    h1 = _silu(h1, eup_dtype)

    out = mm(wo2_ref[...], h1.astype(compute_dtype)) + bo2_ref[...]   # (nOut, TB)

    if apply_softplus:
        out = jax.nn.softplus(out)   # tiny (nOut rows); keep f32 for accuracy

    out_ref[...] = out.astype(out_ref.dtype)


def init_params(key, n_in, n_out, n_nodes=N_NODES, n_layers=N_LAYERS):
    """PyTorch-style uniform init; weights [out, in], biases [out, 1]."""
    keys = jax.random.split(key, 2 * (n_layers + 2))
    k = iter(keys)

    def lin(kw, kb, fan_in, fan_out):
        bound = 1.0 / jnp.sqrt(jnp.float32(fan_in))
        w = jax.random.uniform(kw, (fan_out, fan_in), jnp.float32, -bound, bound)
        b = jax.random.uniform(kb, (fan_out, 1), jnp.float32, -bound, bound)
        return w, b

    w1, b1 = lin(next(k), next(k), n_in, n_nodes)
    whs, bhs = [], []
    for _ in range(n_layers - 1):
        w, b = lin(next(k), next(k), n_nodes, n_nodes)
        whs.append(w)
        bhs.append(b)
    wh = jnp.stack(whs, axis=0)                  # (n_hidden, n_nodes, n_nodes)
    bh = jnp.stack(bhs, axis=0)                  # (n_hidden, n_nodes, 1)
    wo1, bo1 = lin(next(k), next(k), n_nodes + n_in, n_nodes)   # full concat weight
    wo2, bo2 = lin(next(k), next(k), n_nodes, n_out)
    return dict(w1=w1, b1=b1, wh=wh, bh=bh, wo1=wo1, bo1=bo1, wo2=wo2, bo2=bo2)


def _prepare_kernel_params(params, compute_dtype):
    """Zero-pad hidden width to a multiple of 8 and pre-cast weights."""
    n_nodes, n_in = params['w1'].shape
    n_p = _round_up(n_nodes, 8)
    pr = n_p - n_nodes

    w1 = jnp.pad(params['w1'], ((0, pr), (0, 0))).astype(compute_dtype)
    b1 = jnp.pad(params['b1'], ((0, pr), (0, 0)))                         # f32
    wh = jnp.pad(params['wh'], ((0, 0), (0, pr), (0, pr))).astype(compute_dtype)
    bh = jnp.pad(params['bh'], ((0, 0), (0, pr), (0, 0)))                 # f32
    # wo1 acts on concat([h, x]); insert zero cols for padded h rows.
    wo1_h = jnp.pad(params['wo1'][:, :n_nodes], ((0, pr), (0, pr)))
    wo1_x = jnp.pad(params['wo1'][:, n_nodes:], ((0, pr), (0, 0)))
    wo1 = jnp.concatenate([wo1_h, wo1_x], axis=1).astype(compute_dtype)   # (n_p, n_p+n_in)
    bo1 = jnp.pad(params['bo1'], ((0, pr), (0, 0)))                       # f32
    wo2 = jnp.pad(params['wo2'], ((0, 0), (0, pr))).astype(compute_dtype)
    bo2 = params['bo2']                                                   # f32
    return dict(w1=w1, b1=b1, wh=wh, bh=bh, wo1=wo1, bo1=bo1, wo2=wo2, bo2=bo2), n_p


def net_forward(x, params, output='none', tile_b=DEFAULT_TILE_B, use_bf16=True):
    """x: (B, nIn) -> (B, nOut). Batch-tiled Pallas kernel, [feat, batch] inside."""
    B, n_in = x.shape
    n_out = params['wo2'].shape[0]
    n_hidden = params['wh'].shape[0]

    compute_dtype = jnp.bfloat16 if use_bf16 else jnp.float32
    eup_dtype = jnp.bfloat16 if (use_bf16 and _eup_supports_bf16()) else jnp.float32

    kp, n_p = _prepare_kernel_params(params, compute_dtype)
    n_cat = n_p + n_in

    # Batch rides the lane axis; tile must be a multiple of 128.
    tile_b = _round_up(max(128, min(tile_b, B)), 128)
    if B > 128:
        # Guarantee >= 2 grid steps so the "parallel" axis can shard across
        # v7x's two TensorCores (free on single-TC chips).
        tile_b = min(tile_b, _round_up(pl.cdiv(B, 2), 128))
    B_pad = _round_up(B, tile_b)
    grid = (B_pad // tile_b,)

    # Transposed, padded, pre-cast input: (n_in, B_pad) in compute dtype
    # (halves the x-tile DMA in the bf16 path).
    xt = x.T.astype(compute_dtype)
    if B_pad > B:
        xt = jnp.pad(xt, ((0, 0), (0, B_pad - B)))
    # TODO(synk): if callers can provide/consume the [feat, batch] layout
    # directly, this transpose (and the final one) disappears entirely.

    const2 = lambda i: (0, 0)
    const3 = lambda i: (0, 0, 0)

    kernel = functools.partial(
        mlp_kernel,
        n_hidden=n_hidden,
        n_nodes_p=n_p,
        apply_softplus=(output == 'softplus'),
        compute_dtype=compute_dtype,
        eup_dtype=eup_dtype,
    )

    out_t = pl.pallas_call(
        kernel,
        out_shape=jax.ShapeDtypeStruct((n_out, B_pad), jnp.float32),
        grid=grid,
        in_specs=[
            pl.BlockSpec((n_in, tile_b), lambda i: (0, i)),          # x tile
            pl.BlockSpec((n_p, n_in), const2),                       # w1 (resident)
            pl.BlockSpec((n_p, 1), const2),                          # b1
            pl.BlockSpec((n_hidden, n_p, n_p), const3),              # wh
            pl.BlockSpec((n_hidden, n_p, 1), const3),                # bh
            pl.BlockSpec((n_p, n_cat), const2),                      # wo1 (fused concat weight)
            pl.BlockSpec((n_p, 1), const2),                          # bo1
            pl.BlockSpec((n_out, n_p), const2),                      # wo2
            pl.BlockSpec((n_out, 1), const2),                        # bo2
        ],
        out_specs=pl.BlockSpec((n_out, tile_b), lambda i: (0, i)),
        scratch_shapes=[pltpu.VMEM((n_cat, tile_b), jnp.float32)],   # concat buffer
        compiler_params=pltpu.CompilerParams(
            dimension_semantics=("parallel",),
        ),
    )(xt, kp['w1'], kp['b1'], kp['wh'], kp['bh'],
      kp['wo1'], kp['bo1'], kp['wo2'], kp['bo2'])

    return out_t[:, :B].T                                            # (B, nOut)


def net_forward_ref(x, params, output='none'):
    """Pure-JAX reference matching the PyTorch forward (batch-major)."""
    h = jax.nn.silu(x @ params['w1'].T + params['b1'].T)
    for i in range(params['wh'].shape[0]):
        h = jax.nn.silu(h @ params['wh'][i].T + params['bh'][i].T)
    hx = jnp.concatenate([h, x], axis=-1)
    h = hx @ params['wo1'].T + params['bo1'].T
    h = jax.nn.silu(h) @ params['wo2'].T + params['bo2'].T
    if output == 'softplus':
        h = jax.nn.softplus(h)
    return h


if __name__ == "__main__":
    key = jax.random.PRNGKey(0)
    k_param, k_x1, k_x2 = jax.random.split(key, 3)

    n_in, n_out = 4, 3
    params = init_params(k_param, n_in, n_out)

    # f32 path, tight correctness check (single grid step).
    x_small = jax.random.normal(k_x1, (8, n_in), dtype=jnp.float32)
    out_small = jax.block_until_ready(
        net_forward(x_small, params, output='none', use_bf16=False))
    ref_small = net_forward_ref(x_small, params, output='none')
    assert out_small.shape == (8, n_out)
    assert jnp.allclose(out_small, ref_small, atol=1e-4, rtol=1e-4), \
        "mismatch vs reference (f32 path)"

    # Default bf16 path, ragged batch exercising >=2 grid steps + padding.
    x_big = jax.random.normal(k_x2, (300, n_in), dtype=jnp.float32)
    out_big = jax.block_until_ready(
        net_forward(x_big, params, output='softplus'))
    ref_big = net_forward_ref(x_big, params, output='softplus')
    assert out_big.shape == (300, n_out)
    assert jnp.allclose(out_big, ref_big, atol=5e-2, rtol=5e-2), \
        "mismatch vs reference (bf16 path)"

    print("KERNEL_OK")
</pallas_src>

<mosaic_0001>
module attributes {stable_mosaic.version = 11 : i64} {
  func.func @mlp_kernel(%arg0: i32, %arg1: memref<4x128xf32, #tpu.memory_space<vmem>>, %arg2: memref<40x4xf32, #tpu.memory_space<vmem>>, %arg3: memref<40x1xf32, #tpu.memory_space<vmem>>, %arg4: memref<4x40x40xf32, #tpu.memory_space<vmem>>, %arg5: memref<4x40x1xf32, #tpu.memory_space<vmem>>, %arg6: memref<40x44xf32, #tpu.memory_space<vmem>>, %arg7: memref<40x1xf32, #tpu.memory_space<vmem>>, %arg8: memref<3x40xf32, #tpu.memory_space<vmem>>, %arg9: memref<3x1xf32, #tpu.memory_space<vmem>>, %arg10: memref<3x128xf32, #tpu.memory_space<vmem>>, %arg11: memref<44x128xf32, #tpu.memory_space<vmem>>) attributes {dimension_semantics = [#tpu.dimension_semantics<parallel>], iteration_bounds = array<i64: 1>, scalar_prefetch = 0 : i64, scratch_operands = 1 : i64, tpu.core_type = #tpu.core_type<tc>, window_params = [{transform_indices = @transform_0, window_bounds = array<i64: 4, 128>}, {pipeline_mode = #tpu.pipeline_mode<synchronous>, transform_indices = @transform_1, window_bounds = array<i64: 40, 4>}, {pipeline_mode = #tpu.pipeline_mode<synchronous>, transform_indices = @transform_2, window_bounds = array<i64: 40, 1>}, {pipeline_mode = #tpu.pipeline_mode<synchronous>, transform_indices = @transform_3, window_bounds = array<i64: 4, 40, 40>}, {pipeline_mode = #tpu.pipeline_mode<synchronous>, transform_indices = @transform_4, window_bounds = array<i64: 4, 40, 1>}, {pipeline_mode = #tpu.pipeline_mode<synchronous>, transform_indices = @transform_5, window_bounds = array<i64: 40, 44>}, {pipeline_mode = #tpu.pipeline_mode<synchronous>, transform_indices = @transform_6, window_bounds = array<i64: 40, 1>}, {pipeline_mode = #tpu.pipeline_mode<synchronous>, transform_indices = @transform_7, window_bounds = array<i64: 3, 40>}, {pipeline_mode = #tpu.pipeline_mode<synchronous>, transform_indices = @transform_8, window_bounds = array<i64: 3, 1>}, {transform_indices = @transform_9, window_bounds = array<i64: 3, 128>}]} {
    %c0 = arith.constant 0 : index
    %c0_0 = arith.constant 0 : index
    %0 = vector.load %arg1[%c0, %c0_0] : memref<4x128xf32, #tpu.memory_space<vmem>>, vector<4x128xf32>
    %c40 = arith.constant 40 : index
    %c0_1 = arith.constant 0 : index
    %1 = vector.load %arg11[%c40, %c0_1] : memref<44x128xf32, #tpu.memory_space<vmem>>, vector<4x128xf32>
    tpu.vector_store %arg11[%c40, %c0_1], %0 {strides = array<i32>} : memref<44x128xf32, #tpu.memory_space<vmem>>, vector<4x128xf32>,
    %c0_2 = arith.constant 0 : index
    %c0_3 = arith.constant 0 : index
    %2 = vector.load %arg2[%c0_2, %c0_3] : memref<40x4xf32, #tpu.memory_space<vmem>>, vector<40x4xf32>
    %cst = arith.constant dense<0.000000e+00> : vector<40x128xf32>
    %3 = tpu.matmul %2, %0, %cst {dimension_numbers = #tpu.dot_dimension_numbers<[1], [0], [0], [1], [0, 0, 1, 1], [], []>} : vector<40x4xf32>, vector<4x128xf32>, vector<40x128xf32> -> vector<40x128xf32>
    %c0_4 = arith.constant 0 : index
    %c0_5 = arith.constant 0 : index
    %4 = vector.load %arg3[%c0_4, %c0_5] : memref<40x1xf32, #tpu.memory_space<vmem>>, vector<40x1xf32>
    %5 = vector.broadcast %4 : vector<40x1xf32> to vector<40x128xf32>
    %6 = arith.addf %3, %5 : vector<40x128xf32>
    %cst_6 = arith.constant 5.000000e-01 : f32
    %7 = vector.broadcast %cst_6 : f32 to vector<40x128xf32>
    %8 = arith.mulf %7, %6 : vector<40x128xf32>
    %9 = math.tanh %8 : vector<40x128xf32>
    %cst_7 = arith.constant 1.000000e+00 : f32
    %10 = vector.broadcast %cst_7 : f32 to vector<40x128xf32>
    %11 = arith.addf %10, %9 : vector<40x128xf32>
    %12 = arith.mulf %8, %11 : vector<40x128xf32>
    %c0_8 = arith.constant 0 : index
    %c0_9 = arith.constant 0 : index
    %c0_10 = arith.constant 0 : index
    %13 = vector.load %arg4[%c0_8, %c0_9, %c0_10] : memref<4x40x40xf32, #tpu.memory_space<vmem>>, vector<1x40x40xf32>
    %14 = vector.shape_cast %13 : vector<1x40x40xf32> to vector<40x40xf32>
    %cst_11 = arith.constant dense<0.000000e+00> : vector<40x128xf32>
    %15 = tpu.matmul %14, %12, %cst_11 {dimension_numbers = #tpu.dot_dimension_numbers<[1], [0], [0], [1], [0, 0, 1, 1], [], []>} : vector<40x40xf32>, vector<40x128xf32>, vector<40x128xf32> -> vector<40x128xf32>
    %c0_12 = arith.constant 0 : index
    %c0_13 = arith.constant 0 : index
    %c0_14 = arith.constant 0 : index
    %16 = vector.load %arg5[%c0_12, %c0_13, %c0_14] : memref<4x40x1xf32, #tpu.memory_space<vmem>>, vector<1x40x1xf32>
    %17 = vector.shape_cast %16 : vector<1x40x1xf32> to vector<40x1xf32>
    %18 = vector.broadcast %17 : vector<40x1xf32> to vector<40x128xf32>
    %19 = arith.addf %15, %18 : vector<40x128xf32>
    %cst_15 = arith.constant 5.000000e-01 : f32
    %20 = vector.broadcast %cst_15 : f32 to vector<40x128xf32>
    %21 = arith.mulf %20, %19 : vector<40x128xf32>
    %22 = math.tanh %21 : vector<40x128xf32>
    %cst_16 = arith.constant 1.000000e+00 : f32
    %23 = vector.broadcast %cst_16 : f32 to vector<40x128xf32>
    %24 = arith.addf %23, %22 : vector<40x128xf32>
    %25 = arith.mulf %21, %24 : vector<40x128xf32>
    %c1 = arith.constant 1 : index
    %c0_17 = arith.constant 0 : index
    %c0_18 = arith.constant 0 : index
    %26 = vector.load %arg4[%c1, %c0_17, %c0_18] : memref<4x40x40xf32, #tpu.memory_space<vmem>>, vector<1x40x40xf32>
    %27 = vector.shape_cast %26 : vector<1x40x40xf32> to vector<40x40xf32>
    %cst_19 = arith.constant dense<0.000000e+00> : vector<40x128xf32>
    %28 = tpu.matmul %27, %25, %cst_19 {dimension_numbers = #tpu.dot_dimension_numbers<[1], [0], [0], [1], [0, 0, 1, 1], [], []>} : vector<40x40xf32>, vector<40x128xf32>, vector<40x128xf32> -> vector<40x128xf32>
    %c1_20 = arith.constant 1 : index
    %c0_21 = arith.constant 0 : index
    %c0_22 = arith.constant 0 : index
    %29 = vector.load %arg5[%c1_20, %c0_21, %c0_22] : memref<4x40x1xf32, #tpu.memory_space<vmem>>, vector<1x40x1xf32>
    %30 = vector.shape_cast %29 : vector<1x40x1xf32> to vector<40x1xf32>
    %31 = vector.broadcast %30 : vector<40x1xf32> to vector<40x128xf32>
    %32 = arith.addf %28, %31 : vector<40x128xf32>
    %cst_23 = arith.constant 5.000000e-01 : f32
    %33 = vector.broadcast %cst_23 : f32 to vector<40x128xf32>
    %34 = arith.mulf %33, %32 : vector<40x128xf32>
    %35 = math.tanh %34 : vector<40x128xf32>
    %cst_24 = arith.constant 1.000000e+00 : f32
    %36 = vector.broadcast %cst_24 : f32 to vector<40x128xf32>
    %37 = arith.addf %36, %35 : vector<40x128xf32>
    %38 = arith.mulf %34, %37 : vector<40x128xf32>
    %c2 = arith.constant 2 : index
    %c0_25 = arith.constant 0 : index
    %c0_26 = arith.constant 0 : index
    %39 = vector.load %arg4[%c2, %c0_25, %c0_26] : memref<4x40x40xf32, #tpu.memory_space<vmem>>, vector<1x40x40xf32>
    %40 = vector.shape_cast %39 : vector<1x40x40xf32> to vector<40x40xf32>
    %cst_27 = arith.constant dense<0.000000e+00> : vector<40x128xf32>
    %41 = tpu.matmul %40, %38, %cst_27 {dimension_numbers = #tpu.dot_dimension_numbers<[1], [0], [0], [1], [0, 0, 1, 1], [], []>} : vector<40x40xf32>, vector<40x128xf32>, vector<40x128xf32> -> vector<40x128xf32>
    %c2_28 = arith.constant 2 : index
    %c0_29 = arith.constant 0 : index
    %c0_30 = arith.constant 0 : index
    %42 = vector.load %arg5[%c2_28, %c0_29, %c0_30] : memref<4x40x1xf32, #tpu.memory_space<vmem>>, vector<1x40x1xf32>
    %43 = vector.shape_cast %42 : vector<1x40x1xf32> to vector<40x1xf32>
    %44 = vector.broadcast %43 : vector<40x1xf32> to vector<40x128xf32>
    %45 = arith.addf %41, %44 : vector<40x128xf32>
    %cst_31 = arith.constant 5.000000e-01 : f32
    %46 = vector.broadcast %cst_31 : f32 to vector<40x128xf32>
    %47 = arith.mulf %46, %45 : vector<40x128xf32>
    %48 = math.tanh %47 : vector<40x128xf32>
    %cst_32 = arith.constant 1.000000e+00 : f32
    %49 = vector.broadcast %cst_32 : f32 to vector<40x128xf32>
    %50 = arith.addf %49, %48 : vector<40x128xf32>
    %51 = arith.mulf %47, %50 : vector<40x128xf32>
    %c3 = arith.constant 3 : index
    %c0_33 = arith.constant 0 : index
    %c0_34 = arith.constant 0 : index
    %52 = vector.load %arg4[%c3, %c0_33, %c0_34] : memref<4x40x40xf32, #tpu.memory_space<vmem>>, vector<1x40x40xf32>
    %53 = vector.shape_cast %52 : vector<1x40x40xf32> to vector<40x40xf32>
    %cst_35 = arith.constant dense<0.000000e+00> : vector<40x128xf32>
    %54 = tpu.matmul %53, %51, %cst_35 {dimension_numbers = #tpu.dot_dimension_numbers<[1], [0], [0], [1], [0, 0, 1, 1], [], []>} : vector<40x40xf32>, vector<40x128xf32>, vector<40x128xf32> -> vector<40x128xf32>
    %c3_36 = arith.constant 3 : index
    %c0_37 = arith.constant 0 : index
    %c0_38 = arith.constant 0 : index
    %55 = vector.load %arg5[%c3_36, %c0_37, %c0_38] : memref<4x40x1xf32, #tpu.memory_space<vmem>>, vector<1x40x1xf32>
    %56 = vector.shape_cast %55 : vector<1x40x1xf32> to vector<40x1xf32>
    %57 = vector.broadcast %56 : vector<40x1xf32> to vector<40x128xf32>
    %58 = arith.addf %54, %57 : vector<40x128xf32>
    %cst_39 = arith.constant 5.000000e-01 : f32
    %59 = vector.broadcast %cst_39 : f32 to vector<40x128xf32>
    %60 = arith.mulf %59, %58 : vector<40x128xf32>
    %61 = math.tanh %60 : vector<40x128xf32>
    %cst_40 = arith.constant 1.000000e+00 : f32
    %62 = vector.broadcast %cst_40 : f32 to vector<40x128xf32>
    %63 = arith.addf %62, %61 : vector<40x128xf32>
    %64 = arith.mulf %60, %63 : vector<40x128xf32>
    %c0_41 = arith.constant 0 : index
    %c0_42 = arith.constant 0 : index
    %65 = vector.load %arg11[%c0_41, %c0_42] : memref<44x128xf32, #tpu.memory_space<vmem>>, vector<40x128xf32>
    tpu.vector_store %arg11[%c0_41, %c0_42], %64 {strides = array<i32>} : memref<44x128xf32, #tpu.memory_space<vmem>>, vector<40x128xf32>,
    %c0_43 = arith.constant 0 : index
    %c0_44 = arith.constant 0 : index
    %66 = vector.load %arg6[%c0_43, %c0_44] : memref<40x44xf32, #tpu.memory_space<vmem>>, vector<40x44xf32>
    %c0_45 = arith.constant 0 : index
    %c0_46 = arith.constant 0 : index
    %67 = vector.load %arg11[%c0_45, %c0_46] : memref<44x128xf32, #tpu.memory_space<vmem>>, vector<44x128xf32>
    %cst_47 = arith.constant dense<0.000000e+00> : vector<40x128xf32>
    %68 = tpu.matmul %66, %67, %cst_47 {dimension_numbers = #tpu.dot_dimension_numbers<[1], [0], [0], [1], [0, 0, 1, 1], [], []>} : vector<40x44xf32>, vector<44x128xf32>, vector<40x128xf32> -> vector<40x128xf32>
    %c0_48 = arith.constant 0 : index
    %c0_49 = arith.constant 0 : index
    %69 = vector.load %arg7[%c0_48, %c0_49] : memref<40x1xf32, #tpu.memory_space<vmem>>, vector<40x1xf32>
    %70 = vector.broadcast %69 : vector<40x1xf32> to vector<40x128xf32>
    %71 = arith.addf %68, %70 : vector<40x128xf32>
    %cst_50 = arith.constant 5.000000e-01 : f32
    %72 = vector.broadcast %cst_50 : f32 to vector<40x128xf32>
    %73 = arith.mulf %72, %71 : vector<40x128xf32>
    %74 = math.tanh %73 : vector<40x128xf32>
    %cst_51 = arith.constant 1.000000e+00 : f32
    %75 = vector.broadcast %cst_51 : f32 to vector<40x128xf32>
    %76 = arith.addf %75, %74 : vector<40x128xf32>
    %77 = arith.mulf %73, %76 : vector<40x128xf32>
    %c0_52 = arith.constant 0 : index
    %c0_53 = arith.constant 0 : index
    %78 = vector.load %arg8[%c0_52, %c0_53] : memref<3x40xf32, #tpu.memory_space<vmem>>, vector<3x40xf32>
    %cst_54 = arith.constant dense<0.000000e+00> : vector<3x128xf32>
    %79 = tpu.matmul %78, %77, %cst_54 {dimension_numbers = #tpu.dot_dimension_numbers<[1], [0], [0], [1], [0, 0, 1, 1], [], []>} : vector<3x40xf32>, vector<40x128xf32>, vector<3x128xf32> -> vector<3x128xf32>
    %c0_55 = arith.constant 0 : index
    %c0_56 = arith.constant 0 : index
    %80 = vector.load %arg9[%c0_55, %c0_56] : memref<3x1xf32, #tpu.memory_space<vmem>>, vector<3x1xf32>
    %81 = vector.broadcast %80 : vector<3x1xf32> to vector<3x128xf32>
    %82 = arith.addf %79, %81 : vector<3x128xf32>
    %c0_57 = arith.constant 0 : index
    %c0_58 = arith.constant 0 : index
    %83 = vector.load %arg10[%c0_57, %c0_58] : memref<3x128xf32, #tpu.memory_space<vmem>>, vector<3x128xf32>
    tpu.vector_store %arg10[%c0_57, %c0_58], %82 {strides = array<i32>} : memref<3x128xf32, #tpu.memory_space<vmem>>, vector<3x128xf32>,
    return
  }
  func.func @transform_0(%arg0: i32) -> (i32, i32) {
    %c0_i32 = arith.constant 0 : i32
    %c0_i32_0 = arith.constant 0 : i32
    return %c0_i32, %arg0 : i32, i32
  }
  func.func @transform_1(%arg0: i32) -> (i32, i32) {
    %c0_i32 = arith.constant 0 : i32
    %c0_i32_0 = arith.constant 0 : i32
    %c0_i32_1 = arith.constant 0 : i32
    return %c0_i32, %c0_i32_0 : i32, i32
  }
  func.func @transform_2(%arg0: i32) -> (i32, i32) {
    %c0_i32 = arith.constant 0 : i32
    %c0_i32_0 = arith.constant 0 : i32
    %c0_i32_1 = arith.constant 0 : i32
    return %c0_i32, %c0_i32_0 : i32, i32
  }
  func.func @transform_3(%arg0: i32) -> (i32, i32, i32) {
    %c0_i32 = arith.constant 0 : i32
    %c0_i32_0 = arith.constant 0 : i32
    %c0_i32_1 = arith.constant 0 : i32
    %c0_i32_2 = arith.constant 0 : i32
    return %c0_i32, %c0_i32_0, %c0_i32_1 : i32, i32, i32
  }
  func.func @transform_4(%arg0: i32) -> (i32, i32, i32) {
    %c0_i32 = arith.constant 0 : i32
    %c0_i32_0 = arith.constant 0 : i32
    %c0_i32_1 = arith.constant 0 : i32
    %c0_i32_2 = arith.constant 0 : i32
    return %c0_i32, %c0_i32_0, %c0_i32_1 : i32, i32, i32
  }
  func.func @transform_5(%arg0: i32) -> (i32, i32) {
    %c0_i32 = arith.constant 0 : i32
    %c0_i32_0 = arith.constant 0 : i32
    %c0_i32_1 = arith.constant 0 : i32
    return %c0_i32, %c0_i32_0 : i32, i32
  }
  func.func @transform_6(%arg0: i32) -> (i32, i32) {
    %c0_i32 = arith.constant 0 : i32
    %c0_i32_0 = arith.constant 0 : i32
    %c0_i32_1 = arith.constant 0 : i32
    return %c0_i32, %c0_i32_0 : i32, i32
  }
  func.func @transform_7(%arg0: i32) -> (i32, i32) {
    %c0_i32 = arith.constant 0 : i32
    %c0_i32_0 = arith.constant 0 : i32
    %c0_i32_1 = arith.constant 0 : i32
    return %c0_i32, %c0_i32_0 : i32, i32
  }
  func.func @transform_8(%arg0: i32) -> (i32, i32) {
    %c0_i32 = arith.constant 0 : i32
    %c0_i32_0 = arith.constant 0 : i32
    %c0_i32_1 = arith.constant 0 : i32
    return %c0_i32, %c0_i32_0 : i32, i32
  }
  func.func @transform_9(%arg0: i32) -> (i32, i32) {
    %c0_i32 = arith.constant 0 : i32
    %c0_i32_0 = arith.constant 0 : i32
    return %c0_i32, %arg0 : i32, i32
  }
}

</mosaic_0001>

<bundles_post_ra>
// kernel: tpu_custom_call.1
= control target key start
LH: loop header
LB: loop body
LE: loop exit
PB: predicated region body
PF: predicated region fallthrough
CT: control target
= control target key end

     0   :  { %vm86_vm0 = vcmask 1043456   ;;  %v881_v3 = vmov 0   ;;  %vm70_vm1 = vcmask 31744   ;;  %s1154_s0 = inlined_call_operand.vmem [shape: f32[4,128], index: 0, kind: input, shape index: {}]   ;;  %s1155_s1 = inlined_call_operand.vmem [shape: f32[40,4], index: 1, kind: input, shape index: {}]   ;;  %s1156_s2 = inlined_call_operand.vmem [shape: f32[40,1], index: 2, kind: input, shape index: {}]   ;;  %s1157_s3 = inlined_call_operand.vmem [shape: f32[4,40,40], index: 3, kind: input, shape index: {}]   ;;  %s1158_s4 = inlined_call_operand.vmem [shape: f32[4,40,1], index: 4, kind: input, shape index: {}]   ;;  %s1159_s5 = inlined_call_operand.vmem [shape: f32[40,44], index: 5, kind: input, shape index: {}]   ;;  %s1160_s6 = inlined_call_operand.vmem [shape: f32[40,1], index: 6, kind: input, shape index: {}]   ;;  %s1161_s7 = inlined_call_operand.vmem [shape: f32[3,40], index: 7, kind: input, shape index: {}]   ;;  %s1162_s8 = inlined_call_operand.vmem [shape: f32[3,1], index: 8, kind: input, shape index: {}]   ;;  %s1163_s9 = inlined_call_operand.hbm [shape: f32[3,128], index: 9, kind: output, shape index: {}]  }
   0x1   :  { %v33_v0 = vld [vmem:[%s1154_s0] sm:$0xf]  ;;  %v42_v2 = vld [vmem:[%s1156_s2 + $0x10] sm:$0xff]  ;;  %794 = vset.pattern.permute.xlu2 %v881_v3  ;;  %793 = vset.pattern.permute.xlu1 %v881_v3 }
   0x2   :  { %v44_v1 = vld [vmem:[%s1156_s2 + $0x20] sm:$0xff]  ;;  %34 = vst [vmem:[#allocation2 + $0x20] sm:$0xf] %v33_v0  ;;  %v37_v5 = vld [vmem:[%s1155_s1 + $0x10] sm:$0xff]  ;;  %792 = vset.pattern.permute.xlu0 %v881_v3  ;;  %784 = vmatpush.msk.msra.mxu2 %vm86_vm0, %v33_v0 }
   0x3   :  { %v40_v4 = vld [vmem:[%s1156_s2] sm:$0xff]  ;;  %67 = vperm.xlu0 %792, %v44_v1   ;;  %57 = vperm.xlu1 %793, %v42_v2  }
   0x4   :  { %v35_v6 = vld [vmem:[%s1155_s1] sm:$0xff]  ;;  %47 = vperm.xlu2 %794, %v40_v4   ;;  %724 = vmatmul.msk.f32.vlgmr.msra.gmra.mxu2 %vm70_vm1, %v37_v5 }
   0x5   :  { %721 = vmatpush.msk.msra.mxu0 %vm86_vm0, %v33_v0 }
   0x6   :  { %722 = vmatmul.msk.f32.vlgmr.msra.gmra.mxu0 %vm70_vm1, %v35_v6 }
   0x7   :  { %14 = vsyncpa [#allocation4], 0  ;;  %v43_v7 = vld [vmem:[%s1156_s2 + $0x18] sm:$0xff]  ;;  %v41_v8 = vld [vmem:[%s1156_s2 + $0x8] sm:$0xff]  ;;  %vm177_vm2 = vcmask 326656   ;;  %vm603_vm3 = vcmask 359424  }
   0x8   :  { %v151_v9 = vld [vmem:[%s1158_s4 + $0x20] sm:$0xff]  ;;  %v38_v10 = vld [vmem:[%s1155_s1 + $0x18] sm:$0xff]  ;;  %v36_v11 = vld [vmem:[%s1155_s1 + $0x8] sm:$0xff] }
   0x9   :  { %v150_v12 = vld [vmem:[%s1158_s4 + $0x18] sm:$0xff]  ;;  %v149_v13 = vld [vmem:[%s1158_s4 + $0x10] sm:$0xff]  ;;  %v148_v14 = vld [vmem:[%s1158_s4 + $0x8] sm:$0xff] }
   0xa   :  { %v39_v15 = vld [vmem:[%s1155_s1 + $0x20] sm:$0xff]  ;;  %v741_v17 = vld [vmem:[%s1158_s4 + $0x48] sm:$0xff]  ;;  %v739_v19 = vld [vmem:[%s1158_s4 + $0x38] sm:$0xff] }
   0xb   :  { %62 = vperm.xlu0 %792, %v43_v7   ;;  %52 = vperm.xlu1 %793, %v41_v8   ;;  %v147_v16 = vld [vmem:[%s1158_s4] sm:$0xff]  ;;  %v738_v20 = vld [vmem:[%s1158_s4 + $0x30] sm:$0xff]  ;;  %v737_v21 = vld [vmem:[%s1158_s4 + $0x28] sm:$0xff] }
   0xc   :  { %174 = vperm.xlu2 %794, %v151_v9   ;;  %725 = vmatmul.msk.f32.gmra.mxu2 %vm70_vm1, %v38_v10  ;;  %v740_v18 = vld [vmem:[%s1158_s4 + $0x40] sm:$0xff]  ;;  %v756_v22 = vld [vmem:[%s1158_s4 + $0x70] sm:$0xff]  ;;  %v755_v23 = vld [vmem:[%s1158_s4 + $0x68] sm:$0xff] }
   0xd   :  { %v754_v24 = vld [vmem:[%s1158_s4 + $0x60] sm:$0xff]  ;;  %v753_v25 = vld [vmem:[%s1158_s4 + $0x58] sm:$0xff]  ;;  %v752_v26 = vld [vmem:[%s1158_s4 + $0x50] sm:$0xff] }
   0xe   :  { %723 = vmatmul.msk.f32.gmra.mxu0 %vm70_vm1, %v36_v11  ;;  %v771_v27 = vld [vmem:[%s1158_s4 + $0x98] sm:$0xff]  ;;  %v770_v28 = vld [vmem:[%s1158_s4 + $0x90] sm:$0xff]  ;;  %v769_v29 = vld [vmem:[%s1158_s4 + $0x88] sm:$0xff] }
   0xf   :  { %v768_v30 = vld [vmem:[%s1158_s4 + $0x80] sm:$0xff]  ;;  %v767_v31 = vld [vmem:[%s1158_s4 + $0x78] sm:$0xff]  ;;  %v575_v34 = vld [vmem:[%s1160_s6 + $0x10] sm:$0xff]  ;;  %s882_s4 = smov [#allocation3]  }
  0x10   :  { %v577_v32 = vld [vmem:[%s1160_s6 + $0x20] sm:$0xff]  ;;  %v576_v33 = vld [vmem:[%s1160_s6 + $0x18] sm:$0xff]  ;;  %v574_v35 = vld [vmem:[%s1160_s6 + $0x8] sm:$0xff]  ;;  %s710_s2 = sshll.u32 %s882_s4, 4  ;;  %s711_s2 = int_to_ptr.vmem [resolvable:$true] %s710_s2 }
  0x11   :  { %v573_v36 = vld [vmem:[%s1160_s6] sm:$0xff]  ;;  %v144_v10 = vld [vmem:[%s1157_s3 + $0x10] sm:$0xff]  ;;  %v143_v11 = vld [vmem:[%s1157_s3 + $0x8] sm:$0xff]  ;;  %s712_s6 = sshll.u32 %s1163_s9, 4  ;;  %s713_s6 = int_to_ptr.hbm [resolvable:$true] %s712_s6 }
  0x12   :  { %v675_v37 = vld [vmem:[%s1162_s8] sm:$0x7] }
  0x13   :  { %169 = vperm.xlu0 %792, %v150_v12   ;;  %164 = vperm.xlu1 %793, %v149_v13   ;;  %v142_v9 = vld [vmem:[%s1157_s3] sm:$0xff]  ;;  %v145_v12 = vld [vmem:[%s1157_s3 + $0x18] sm:$0xff] }
  0x14   :  { %159 = vperm.xlu2 %794, %v148_v14   ;;  %726 = vmatmul.msk.f32.gmra.mxu2 %vm70_vm1, %v39_v15  ;;  %v146_v13 = vld [vmem:[%s1157_s3 + $0x20] sm:$0xff] }
  0x1b   :  { %154 = vperm.xlu0 %792, %v147_v16   ;;  %279 = vperm.xlu1 %793, %v741_v17  }
  0x1c   :  { %274 = vperm.xlu2 %794, %v740_v18  }
  0x23   :  { %269 = vperm.xlu0 %792, %v739_v19   ;;  %264 = vperm.xlu1 %793, %v738_v20  }
  0x24   :  { %259 = vperm.xlu2 %794, %v737_v21  }
  0x2b   :  { %383 = vperm.xlu0 %792, %v756_v22   ;;  %378 = vperm.xlu1 %793, %v755_v23  }
  0x2c   :  { %373 = vperm.xlu2 %794, %v754_v24  }
  0x33   :  { %368 = vperm.xlu0 %792, %v753_v25   ;;  %363 = vperm.xlu1 %793, %v752_v26  }
  0x34   :  { %487 = vperm.xlu2 %794, %v771_v27  }
  0x3b   :  { %482 = vperm.xlu0 %792, %v770_v28   ;;  %477 = vperm.xlu1 %793, %v769_v29  }
  0x3c   :  { %472 = vperm.xlu2 %794, %v768_v30  }
  0x43   :  { %467 = vperm.xlu0 %792, %v767_v31   ;;  %600 = vperm.xlu1 %793, %v577_v32  }
  0x44   :  { %595 = vperm.xlu2 %794, %v576_v33  }
  0x4b   :  { %590 = vperm.xlu0 %792, %v575_v34   ;;  %585 = vperm.xlu1 %793, %v574_v35  }
  0x4c   :  { %580 = vperm.xlu2 %794, %v573_v36  }
  0x53   :  { %678 = vperm.xlu0 %792, %v675_v37  }
  0x5e   :  { %v48_v50 = vpop.permute.xlu2 %47 }
  0x66   :  { %v175_v16 = vpop.permute.xlu2 %174 }
  0x6e   :  { %v160_v23 = vpop.permute.xlu2 %159 }
  0x75   :  { %v68_v38 = vpop.permute.xlu0 %67  ;;  %v58_v41 = vpop.permute.xlu1 %57 }
  0x7d   :  { %v63_v43 = vpop.permute.xlu0 %62  ;;  %v53_v47 = vpop.permute.xlu1 %52 }
  0x83   :  { %v107_v40 = vpop.f32.mrf.mxu0 }
  0x84   :  { %v108_v53 = vadd.f32 %v107_v40, %v48_v50  ;;  %v733_v50 = vld [vmem:[%s1157_s3 + $0x30] sm:$0xff] }
  0x85   :  { %v170_v17 = vpop.permute.xlu0 %169  ;;  %v165_v19 = vpop.permute.xlu1 %164 }
  0x86   :  { %v122_v57 = vmul.f32 0.5, %v108_v53  ;;  %v736_v53 = vld [vmem:[%s1157_s3 + $0x48] sm:$0xff] }
  0x87   :  { %v113_v39 = vpop.f32.mrf.mxu2 }
  0x88   :  { %v114_v45 = vadd.f32 %v113_v39, %v58_v41 }
  0x8a   :  { %v124_v51 = vmul.f32 0.5, %v114_v45 }
  0x8b   :  { %v110_v46 = vpop.f32.mrf.mxu0 }
  0x8c   :  { %v111_v48 = vadd.f32 %v110_v46, %v53_v47 }
  0x8d   :  { %v155_v26 = vpop.permute.xlu0 %154 }
  0x8e   :  { %v123_v55 = vmul.f32 0.5, %v111_v48 }
  0x8f   :  { %v116_v42 = vpop.f32.mrf.mxu2 }
  0x90   :  { %v117_v44 = vadd.f32 %v116_v42, %v63_v43 }
  0x92   :  { %v125_v49 = vmul.f32 0.5, %v117_v44 }
  0x94   :  { %795 = vtanh.f32 %v125_v49 }
  0x95   :  { %797 = vtanh.f32 %v124_v51 }
  0x97   :  { %v119_v52 = vpop.f32.mrf.mxu2 }
  0x98   :  { %v120_v54 = vadd.f32 %v119_v52, %v68_v38  ;;  %v735_v52 = vld [vmem:[%s1157_s3 + $0x40] sm:$0xff] }
  0x9a   :  { %v126_v56 = vmul.f32 0.5, %v120_v54  ;;  %v796_v58 = vpop.eup %795 }
  0x9b   :  { %v798_v59 = vpop.eup %797  ;;  %v135_v62 = vadd.f32 1.0, %v796_v58  ;;  %v275_v58 = vpop.permute.xlu2 %274 }
  0x9c   :  { %799 = vtanh.f32 %v126_v56  ;;  %v134_v1 = vadd.f32 1.0, %v798_v59 }
  0x9d   :  { %801 = vtanh.f32 %v123_v55  ;;  %v140_v3 = vmul.f32 %v135_v62, %v125_v49  ;;  %v732_v49 = vld [vmem:[%s1157_s3 + $0x28] sm:$0xff] }
  0x9e   :  { %803 = vtanh.f32 %v122_v57  ;;  %v139_v5 = vmul.f32 %v134_v1, %v124_v51  ;;  %v734_v51 = vld [vmem:[%s1157_s3 + $0x38] sm:$0xff] }
  0xa2   :  { %v800_v60 = vpop.eup %799 }
  0xa3   :  { %v136_v61 = vadd.f32 1.0, %v800_v60  ;;  %v802_v63 = vpop.eup %801  ;;  %v270_v60 = vpop.permute.xlu0 %269 }
  0xa4   :  { %v804_v2 = vpop.eup %803  ;;  %v133_v4 = vadd.f32 1.0, %v802_v63 }
  0xa5   :  { %v141_v0 = vmul.f32 %v136_v61, %v126_v56  ;;  %v132_v6 = vadd.f32 1.0, %v804_v2  ;;  %v260_v2 = vpop.permute.xlu2 %259 }
  0xa6   :  { %v138_v7 = vmul.f32 %v133_v4, %v123_v55 }
  0xa7   :  { %204 = vmatpush.msra.mxu1 %v141_v0  ;;  %785 = vmatpush.msra.mxu3 %v141_v0  ;;  %v137_v8 = vmul.f32 %v132_v6, %v122_v57  ;;  %v280_v57 = vpop.permute.xlu1 %279 }
  0xa9   :  { %205 = vmatpush.msra.mxu1 %v140_v3  ;;  %786 = vmatpush.msra.mxu3 %v140_v3 }
  0xab   :  { %206 = vmatpush.msra.mxu1 %v139_v5  ;;  %787 = vmatpush.msra.mxu3 %v139_v5 }
  0xad   :  { %207 = vmatpush.msra.mxu1 %v138_v7  ;;  %788 = vmatpush.msra.mxu3 %v138_v7 }
  0xaf   :  { %208 = vmatpush.msra.mxu1 %v137_v8  ;;  %789 = vmatpush.msra.mxu3 %v137_v8  ;;  %v265_v63 = vpop.permute.xlu1 %264 }
  0xb0   :  { %727 = vmatmul.msk.f32.vlgmr.msra.gmra.mxu1 %vm177_vm2, %v142_v9  ;;  %729 = vmatmul.msk.f32.vlgmr.msra.gmra.mxu3 %vm177_vm2, %v144_v10 }
  0xb8   :  { %728 = vmatmul.msk.f32.gmra.mxu1 %vm177_vm2, %v143_v11  ;;  %730 = vmatmul.msk.f32.gmra.mxu3 %vm177_vm2, %v145_v12 }
  0xc0   :  { %731 = vmatmul.msk.f32.gmra.mxu3 %vm177_vm2, %v146_v13 }
 0x12d   :  { %v210_v15 = vpop.f32.mrf.mxu1 }
 0x12e   :  { %v211_v29 = vadd.f32 %v210_v15, %v155_v26  ;;  %v748_v26 = vld [vmem:[%s1157_s3 + $0x58] sm:$0xff] }
 0x130   :  { %v225_v33 = vmul.f32 0.5, %v211_v29  ;;  %v751_v29 = vld [vmem:[%s1157_s3 + $0x70] sm:$0xff] }
 0x133   :  { %v216_v14 = vpop.f32.mrf.mxu3 }
 0x134   :  { %v217_v21 = vadd.f32 %v216_v14, %v165_v19 }
 0x135   :  { %v213_v22 = vpop.f32.mrf.mxu1 }
 0x136   :  { %v214_v24 = vadd.f32 %v213_v22, %v160_v23  ;;  %v227_v27 = vmul.f32 0.5, %v217_v21 }
 0x138   :  { %v226_v31 = vmul.f32 0.5, %v214_v24 }
 0x13b   :  { %v219_v18 = vpop.f32.mrf.mxu3 }
 0x13c   :  { %v220_v20 = vadd.f32 %v219_v18, %v170_v17 }
 0x13e   :  { %v228_v25 = vmul.f32 0.5, %v220_v20 }
 0x140   :  { %805 = vtanh.f32 %v228_v25 }
 0x141   :  { %807 = vtanh.f32 %v227_v27 }
 0x143   :  { %v222_v28 = vpop.f32.mrf.mxu3 }
 0x144   :  { %v223_v30 = vadd.f32 %v222_v28, %v175_v16  ;;  %v750_v28 = vld [vmem:[%s1157_s3 + $0x68] sm:$0xff] }
 0x146   :  { %v229_v32 = vmul.f32 0.5, %v223_v30  ;;  %v806_v34 = vpop.eup %805 }
 0x147   :  { %v808_v35 = vpop.eup %807  ;;  %v238_v38 = vadd.f32 1.0, %v806_v34  ;;  %v379_v34 = vpop.permute.xlu1 %378 }
 0x148   :  { %809 = vtanh.f32 %v229_v32  ;;  %v237_v41 = vadd.f32 1.0, %v808_v35 }
 0x149   :  { %811 = vtanh.f32 %v226_v31  ;;  %v243_v43 = vmul.f32 %v238_v38, %v228_v25  ;;  %v747_v25 = vld [vmem:[%s1157_s3 + $0x50] sm:$0xff] }
 0x14a   :  { %813 = vtanh.f32 %v225_v33  ;;  %v242_v45 = vmul.f32 %v237_v41, %v227_v27  ;;  %v749_v27 = vld [vmem:[%s1157_s3 + $0x60] sm:$0xff] }
 0x14e   :  { %v810_v36 = vpop.eup %809 }
 0x14f   :  { %v239_v37 = vadd.f32 1.0, %v810_v36  ;;  %v812_v39 = vpop.eup %811  ;;  %v374_v36 = vpop.permute.xlu2 %373 }
 0x150   :  { %v814_v42 = vpop.eup %813  ;;  %v236_v44 = vadd.f32 1.0, %v812_v39 }
 0x151   :  { %v244_v40 = vmul.f32 %v239_v37, %v229_v32  ;;  %v235_v46 = vadd.f32 1.0, %v814_v42  ;;  %v364_v42 = vpop.permute.xlu1 %363 }
 0x152   :  { %v241_v47 = vmul.f32 %v236_v44, %v226_v31 }
 0x153   :  { %308 = vmatpush.msrb.mxu2 %v244_v40  ;;  %v240_v48 = vmul.f32 %v235_v46, %v225_v33  ;;  %v384_v33 = vpop.permute.xlu0 %383 }
 0x155   :  { %309 = vmatpush.msrb.mxu2 %v243_v43 }
 0x157   :  { %310 = vmatpush.msrb.mxu2 %v242_v45 }
 0x159   :  { %311 = vmatpush.msrb.mxu2 %v241_v47 }
 0x15b   :  { %312 = vmatpush.msrb.mxu2 %v240_v48  ;;  %v369_v39 = vpop.permute.xlu0 %368 }
 0x15c   :  { %742 = vmatmul.msk.f32.vlgmr.msrb.gmra.mxu2 %vm177_vm2, %v732_v49 }
 0x164   :  { %743 = vmatmul.msk.f32.gmra.mxu2 %vm177_vm2, %v733_v50 }
 0x16c   :  { %744 = vmatmul.msk.f32.gmra.mxu2 %vm177_vm2, %v734_v51 }
 0x174   :  { %745 = vmatmul.msk.f32.gmra.mxu2 %vm177_vm2, %v735_v52 }
 0x17c   :  { %746 = vmatmul.msk.f32.gmra.mxu2 %vm177_vm2, %v736_v53 }
 0x1df   :  { %v314_v54 = vpop.f32.mrf.mxu2 }
 0x1e0   :  { %v315_v5 = vadd.f32 %v314_v54, %v260_v2  ;;  %v763_v2 = vld [vmem:[%s1157_s3 + $0x80] sm:$0xff] }
 0x1e2   :  { %v329_v9 = vmul.f32 0.5, %v315_v5  ;;  %v766_v5 = vld [vmem:[%s1157_s3 + $0x98] sm:$0xff] }
 0x1e7   :  { %v317_v55 = vpop.f32.mrf.mxu2 }
 0x1e8   :  { %v318_v0 = vadd.f32 %v317_v55, %v265_v63 }
 0x1ea   :  { %v330_v7 = vmul.f32 0.5, %v318_v0 }
 0x1ef   :  { %v320_v56 = vpop.f32.mrf.mxu2 }
 0x1f0   :  { %v321_v62 = vadd.f32 %v320_v56, %v270_v60 }
 0x1f2   :  { %v331_v3 = vmul.f32 0.5, %v321_v62 }
 0x1f7   :  { %v323_v59 = vpop.f32.mrf.mxu2 }
 0x1f8   :  { %v324_v61 = vadd.f32 %v323_v59, %v275_v58 }
 0x1fa   :  { %v332_v1 = vmul.f32 0.5, %v324_v61 }
 0x1fc   :  { %815 = vtanh.f32 %v332_v1 }
 0x1fd   :  { %817 = vtanh.f32 %v331_v3 }
 0x1ff   :  { %v326_v4 = vpop.f32.mrf.mxu2 }
 0x200   :  { %v327_v6 = vadd.f32 %v326_v4, %v280_v57  ;;  %v765_v4 = vld [vmem:[%s1157_s3 + $0x90] sm:$0xff] }
 0x202   :  { %v333_v8 = vmul.f32 0.5, %v327_v6  ;;  %v816_v10 = vpop.eup %815  ;;  %v483_v6 = vpop.permute.xlu0 %482 }
 0x203   :  { %v818_v11 = vpop.eup %817  ;;  %v342_v14 = vadd.f32 1.0, %v816_v10 }
 0x204   :  { %819 = vtanh.f32 %v333_v8  ;;  %v341_v17 = vadd.f32 1.0, %v818_v11 }
 0x205   :  { %821 = vtanh.f32 %v330_v7  ;;  %v347_v19 = vmul.f32 %v342_v14, %v332_v1  ;;  %v762_v1 = vld [vmem:[%s1157_s3 + $0x78] sm:$0xff] }
 0x206   :  { %823 = vtanh.f32 %v329_v9  ;;  %v346_v21 = vmul.f32 %v341_v17, %v331_v3  ;;  %v764_v3 = vld [vmem:[%s1157_s3 + $0x88] sm:$0xff] }
 0x20a   :  { %v820_v12 = vpop.eup %819 }
 0x20b   :  { %v343_v13 = vadd.f32 1.0, %v820_v12  ;;  %v822_v15 = vpop.eup %821 }
 0x20c   :  { %v824_v18 = vpop.eup %823  ;;  %v340_v20 = vadd.f32 1.0, %v822_v15 }
 0x20d   :  { %v348_v16 = vmul.f32 %v343_v13, %v333_v8  ;;  %v339_v22 = vadd.f32 1.0, %v824_v18  ;;  %v468_v8 = vpop.permute.xlu0 %467  ;;  %v572_v18 = vld [vmem:[#allocation2 + $0x20] sm:$0xf] }
 0x20e   :  { %v345_v23 = vmul.f32 %v340_v20, %v330_v7  ;;  %v488_v7 = vpop.permute.xlu2 %487  ;;  %777 = vmatpush.msk.msrb.mxu1 %vm86_vm0, %v572_v18  ;;  %v478_v20 = vpop.permute.xlu1 %477  ;;  %v674_v18 = vld [vmem:[%s1161_s7] sm:$0x7] }
 0x20f   :  { %412 = vmatpush.msrb.mxu3 %v348_v16  ;;  %v344_v24 = vmul.f32 %v339_v22, %v329_v9 }
 0x211   :  { %413 = vmatpush.msrb.mxu3 %v347_v19 }
 0x213   :  { %414 = vmatpush.msrb.mxu3 %v346_v21 }
 0x215   :  { %415 = vmatpush.msrb.mxu3 %v345_v23 }
 0x216   :  { %v473_v12 = vpop.permute.xlu2 %472 }
 0x217   :  { %416 = vmatpush.msrb.mxu3 %v344_v24 }
 0x218   :  { %757 = vmatmul.msk.f32.vlgmr.msrb.gmra.mxu3 %vm177_vm2, %v747_v25 }
 0x220   :  { %758 = vmatmul.msk.f32.gmra.mxu3 %vm177_vm2, %v748_v26 }
 0x228   :  { %759 = vmatmul.msk.f32.gmra.mxu3 %vm177_vm2, %v749_v27 }
 0x230   :  { %760 = vmatmul.msk.f32.gmra.mxu3 %vm177_vm2, %v750_v28 }
 0x238   :  { %761 = vmatmul.msk.f32.gmra.mxu3 %vm177_vm2, %v751_v29 }
 0x29b   :  { %v418_v30 = vpop.f32.mrf.mxu3 }
 0x29c   :  { %v419_v45 = vadd.f32 %v418_v30, %v364_v42  ;;  %v562_v42 = vld [vmem:[%s1159_s5] sm:$0xff] }
 0x29e   :  { %v433_v49 = vmul.f32 0.5, %v419_v45  ;;  %v565_v45 = vld [vmem:[%s1159_s5 + $0x18] sm:$0xff] }
 0x2a3   :  { %v421_v31 = vpop.f32.mrf.mxu3 }
 0x2a4   :  { %v422_v40 = vadd.f32 %v421_v31, %v369_v39 }
 0x2a6   :  { %v434_v47 = vmul.f32 0.5, %v422_v40 }
 0x2ab   :  { %v424_v32 = vpop.f32.mrf.mxu3 }
 0x2ac   :  { %v425_v38 = vadd.f32 %v424_v32, %v374_v36 }
 0x2ae   :  { %v435_v43 = vmul.f32 0.5, %v425_v38 }
 0x2b3   :  { %v427_v35 = vpop.f32.mrf.mxu3 }
 0x2b4   :  { %v428_v37 = vadd.f32 %v427_v35, %v379_v34 }
 0x2b6   :  { %v436_v41 = vmul.f32 0.5, %v428_v37 }
 0x2b8   :  { %825 = vtanh.f32 %v436_v41 }
 0x2b9   :  { %827 = vtanh.f32 %v435_v43 }
 0x2bb   :  { %v430_v44 = vpop.f32.mrf.mxu3 }
 0x2bc   :  { %v431_v46 = vadd.f32 %v430_v44, %v384_v33  ;;  %v564_v44 = vld [vmem:[%s1159_s5 + $0x10] sm:$0xff] }
 0x2be   :  { %v437_v48 = vmul.f32 0.5, %v431_v46  ;;  %v826_v50 = vpop.eup %825  ;;  %v566_v46 = vld [vmem:[%s1159_s5 + $0x20] sm:$0xff] }
 0x2bf   :  { %v828_v51 = vpop.eup %827  ;;  %v446_v54 = vadd.f32 1.0, %v826_v50  ;;  %v601_v50 = vpop.permute.xlu1 %600 }
 0x2c0   :  { %829 = vtanh.f32 %v437_v48  ;;  %v445_v57 = vadd.f32 1.0, %v828_v51  ;;  %v596_v51 = vpop.permute.xlu2 %595 }
 0x2c1   :  { %831 = vtanh.f32 %v434_v47  ;;  %v451_v59 = vmul.f32 %v446_v54, %v436_v41 }
 0x2c2   :  { %833 = vtanh.f32 %v433_v49  ;;  %v450_v61 = vmul.f32 %v445_v57, %v435_v43  ;;  %v563_v43 = vld [vmem:[%s1159_s5 + $0x8] sm:$0xff] }
 0x2c6   :  { %v830_v52 = vpop.eup %829 }
 0x2c7   :  { %v447_v53 = vadd.f32 1.0, %v830_v52  ;;  %v832_v55 = vpop.eup %831 }
 0x2c8   :  { %v834_v58 = vpop.eup %833  ;;  %v444_v60 = vadd.f32 1.0, %v832_v55 }
 0x2c9   :  { %v452_v56 = vmul.f32 %v447_v53, %v437_v48  ;;  %v443_v62 = vadd.f32 1.0, %v834_v58  ;;  %v591_v53 = vpop.permute.xlu0 %590 }
 0x2ca   :  { %v449_v63 = vmul.f32 %v444_v60, %v434_v47 }
 0x2cb   :  { %516 = vmatpush.msrb.mxu0 %v452_v56  ;;  %v448_v0 = vmul.f32 %v443_v62, %v433_v49  ;;  %v586_v56 = vpop.permute.xlu1 %585 }
 0x2cd   :  { %517 = vmatpush.msrb.mxu0 %v451_v59  ;;  %v581_v59 = vpop.permute.xlu2 %580 }
 0x2cf   :  { %518 = vmatpush.msrb.mxu0 %v450_v61 }
 0x2d1   :  { %519 = vmatpush.msrb.mxu0 %v449_v63 }
 0x2d3   :  { %520 = vmatpush.msrb.mxu0 %v448_v0 }
 0x2d4   :  { %772 = vmatmul.msk.f32.vlgmr.msrb.gmra.mxu0 %vm177_vm2, %v762_v1 }
 0x2dc   :  { %773 = vmatmul.msk.f32.gmra.mxu0 %vm177_vm2, %v763_v2 }
 0x2e4   :  { %774 = vmatmul.msk.f32.gmra.mxu0 %vm177_vm2, %v764_v3 }
 0x2ec   :  { %775 = vmatmul.msk.f32.gmra.mxu0 %vm177_vm2, %v765_v4 }
 0x2f4   :  { %776 = vmatmul.msk.f32.gmra.mxu0 %vm177_vm2, %v766_v5 }
 0x351   :  { %v522_v9 = vpop.f32.mrf.mxu0 }
 0x352   :  { %v523_v10 = vadd.f32 %v522_v9, %v468_v8 }
 0x354   :  { %v537_v11 = vmul.f32 0.5, %v523_v10 }
 0x356   :  { %835 = vtanh.f32 %v537_v11 }
 0x359   :  { %v525_v13 = vpop.f32.mrf.mxu0 }
 0x35a   :  { %v526_v14 = vadd.f32 %v525_v13, %v473_v12 }
 0x35c   :  { %v836_v15 = vpop.eup %835  ;;  %v538_v16 = vmul.f32 0.5, %v526_v14 }
 0x35d   :  { %v547_v17 = vadd.f32 1.0, %v836_v15 }
 0x35e   :  { %837 = vtanh.f32 %v538_v16 }
 0x35f   :  { %v552_v19 = vmul.f32 %v547_v17, %v537_v11 }
 0x361   :  { %v528_v21 = vpop.f32.mrf.mxu0 }
 0x362   :  { %v529_v22 = vadd.f32 %v528_v21, %v478_v20 }
 0x364   :  { %v838_v23 = vpop.eup %837  ;;  %v539_v24 = vmul.f32 0.5, %v529_v22 }
 0x365   :  { %v548_v25 = vadd.f32 1.0, %v838_v23 }
 0x366   :  { %839 = vtanh.f32 %v539_v24 }
 0x367   :  { %v553_v26 = vmul.f32 %v548_v25, %v538_v16 }
 0x369   :  { %v531_v27 = vpop.f32.mrf.mxu0 }
 0x36a   :  { %v532_v28 = vadd.f32 %v531_v27, %v483_v6 }
 0x36c   :  { %v840_v29 = vpop.eup %839  ;;  %v540_v30 = vmul.f32 0.5, %v532_v28 }
 0x36d   :  { %v549_v31 = vadd.f32 1.0, %v840_v29 }
 0x36e   :  { %841 = vtanh.f32 %v540_v30 }
 0x36f   :  { %v554_v32 = vmul.f32 %v549_v31, %v539_v24 }
 0x371   :  { %v534_v33 = vpop.f32.mrf.mxu0 }
 0x372   :  { %v535_v34 = vadd.f32 %v534_v33, %v488_v7 }
 0x374   :  { %v842_v35 = vpop.eup %841  ;;  %v541_v36 = vmul.f32 0.5, %v535_v34 }
 0x375   :  { %v550_v37 = vadd.f32 1.0, %v842_v35 }
 0x376   :  { %843 = vtanh.f32 %v541_v36 }
 0x377   :  { %v555_v38 = vmul.f32 %v550_v37, %v540_v30 }
 0x37c   :  { %v844_v39 = vpop.eup %843 }
 0x37d   :  { %v551_v40 = vadd.f32 1.0, %v844_v39 }
 0x37f   :  { %v556_v41 = vmul.f32 %v551_v40, %v541_v36 }
 0x381   :  { %633 = vmatpush.msrb.mxu1 %v556_v41 }
 0x383   :  { %634 = vmatpush.msrb.mxu1 %v555_v38 }
 0x385   :  { %635 = vmatpush.msrb.mxu1 %v554_v32 }
 0x387   :  { %636 = vmatpush.msrb.mxu1 %v553_v26 }
 0x389   :  { %637 = vmatpush.msrb.mxu1 %v552_v19  ;;  %v679_v19 = vpop.permute.xlu0 %678 }
 0x38a   :  { %778 = vmatmul.msk.f32.vlgmr.msrb.gmra.mxu1 %vm603_vm3, %v562_v42 }
 0x392   :  { %779 = vmatmul.msk.f32.gmra.mxu1 %vm603_vm3, %v563_v43 }
 0x39a   :  { %780 = vmatmul.msk.f32.gmra.mxu1 %vm603_vm3, %v564_v44 }
 0x3a2   :  { %781 = vmatmul.msk.f32.gmra.mxu1 %vm603_vm3, %v565_v45 }
 0x3aa   :  { %782 = vmatmul.msk.f32.gmra.mxu1 %vm603_vm3, %v566_v46 }
 0x407   :  { %v639_v47 = vpop.f32.mrf.mxu1 }
 0x408   :  { %v640_v62 = vadd.f32 %v639_v47, %v581_v59 }
 0x40a   :  { %v654_v2 = vmul.f32 0.5, %v640_v62 }
 0x40f   :  { %v642_v48 = vpop.f32.mrf.mxu1 }
 0x410   :  { %v643_v57 = vadd.f32 %v642_v48, %v586_v56 }
 0x412   :  { %v655_v0 = vmul.f32 0.5, %v643_v57 }
 0x417   :  { %v645_v49 = vpop.f32.mrf.mxu1 }
 0x418   :  { %v646_v55 = vadd.f32 %v645_v49, %v591_v53 }
 0x41a   :  { %v656_v60 = vmul.f32 0.5, %v646_v55 }
 0x41f   :  { %v648_v52 = vpop.f32.mrf.mxu1 }
 0x420   :  { %v649_v54 = vadd.f32 %v648_v52, %v596_v51 }
 0x422   :  { %v657_v58 = vmul.f32 0.5, %v649_v54 }
 0x424   :  { %845 = vtanh.f32 %v657_v58 }
 0x425   :  { %847 = vtanh.f32 %v656_v60 }
 0x427   :  { %v651_v61 = vpop.f32.mrf.mxu1 }
 0x428   :  { %v652_v63 = vadd.f32 %v651_v61, %v601_v50 }
 0x42a   :  { %v658_v1 = vmul.f32 0.5, %v652_v63  ;;  %v846_v3 = vpop.eup %845 }
 0x42b   :  { %v848_v4 = vpop.eup %847  ;;  %v667_v6 = vadd.f32 1.0, %v846_v3 }
 0x42c   :  { %849 = vtanh.f32 %v658_v1  ;;  %v666_v9 = vadd.f32 1.0, %v848_v4 }
 0x42d   :  { %851 = vtanh.f32 %v655_v0  ;;  %v672_v13 = vmul.f32 %v667_v6, %v657_v58 }
 0x42e   :  { %853 = vtanh.f32 %v654_v2  ;;  %v671_v15 = vmul.f32 %v666_v9, %v656_v60 }
 0x432   :  { %v850_v5 = vpop.eup %849 }
 0x433   :  { %v668_v7 = vadd.f32 1.0, %v850_v5  ;;  %v852_v8 = vpop.eup %851 }
 0x434   :  { %v854_v11 = vpop.eup %853  ;;  %v665_v12 = vadd.f32 1.0, %v852_v8 }
 0x435   :  { %v673_v10 = vmul.f32 %v668_v7, %v658_v1  ;;  %v664_v14 = vadd.f32 1.0, %v854_v11 }
 0x436   :  { %v670_v16 = vmul.f32 %v665_v12, %v655_v0 }
 0x437   :  { %695 = vmatpush.msra.mxu0 %v673_v10  ;;  %v669_v17 = vmul.f32 %v664_v14, %v654_v2 }
 0x439   :  { %696 = vmatpush.msra.mxu0 %v672_v13 }
 0x43b   :  { %697 = vmatpush.msra.mxu0 %v671_v15 }
 0x43d   :  { %698 = vmatpush.msra.mxu0 %v670_v16 }
 0x43f   :  { %699 = vmatpush.msra.mxu0 %v669_v17 }
 0x440   :  { %783 = vmatmul.msk.f32.vlgmr.msra.gmra.mxu0 %vm177_vm2, %v674_v18 }
 0x4bd   :  { %v701_v20 = vpop.f32.mrf.mxu0 }
 0x4be   :  { %v702_v21 = vadd.f32 %v701_v20, %v679_v19 }
 0x4c0   :  { %704 = vst [vmem:[#allocation3] sm:$0x7] %v702_v21 }
 0x4c1   :  { %715 = dma.vmem_to_hbm [thread:$0]  %s711_s2, 64, %s713_s6, [#allocation4]  }
 0x4c2   :  { %879 = dma.done.wait [#allocation4], 64  }
 0x4c3   :  { %880 = vsyncadd [#allocation4], 4294967232 }
 0x4c4   :  { %720 = vsyncpa [#allocation4], 1 }

</bundles_post_ra>
